<compile_context>
chip_gen: v7x
topology: tpu7x:2x2x1
jax: 0.10.0
libtpu: 0.0.40
codegen_flags: <defaults>
</compile_context>

<pallas_src>
import jax
import jax.numpy as jnp
from jax.experimental import pallas as pl
from jax.experimental.pallas import tpu as pltpu


def _make_hybrid_loss_kernel(C, H, W, spatial_tv, spectral_tv):
    """Builds a kernel specialised (at trace time) on the enabled loss terms.

    Output layout (SMEM, shape (B, 4), f32); row b holds this image's sums:
      [b, 0] = sum |y - gt|                              (L1 numerator)
      [b, 1] = sum (y[:, 1:, :] - y[:, :-1, :])^2 over H (spatial TV, height)
      [b, 2] = sum (y[:, :, 1:] - y[:, :, :-1])^2 over W (spatial TV, width)
      [b, 3] = sum (y[1:, :, :] - y[:-1, :, :])^2        (spectral TV, channel)
    Disabled / degenerate terms are written as 0.
    """
    HW = H * W

    def kernel(y_ref, gt_ref, out_ref):
        b = pl.program_id(0)

        y = y_ref[0].astype(jnp.float32)     # (C, H*W)
        gt = gt_ref[0].astype(jnp.float32)   # (C, H*W)

        # L1 numerator (always needed).
        out_ref[b, 0] = jnp.sum(jnp.abs(y - gt))

        if spatial_tv and (H > 1 or W > 1):
            # Flat spatial index p = h*W + w along the lane axis.
            lane = jax.lax.broadcasted_iota(jnp.int32, (C, HW), 1)

        if spatial_tv and H > 1:
            # Height diff pairs flat index p with p + W.
            # roll by (HW - W) == roll by -W:  rolled[p] = y[(p + W) % HW]
            y_h = pltpu.roll(y, HW - W, axis=1)
            dh = jnp.where(lane < HW - W, y_h - y, 0.0)
            out_ref[b, 1] = jnp.sum(dh * dh)
        else:
            out_ref[b, 1] = 0.0

        if spatial_tv and W > 1:
            # Width diff pairs flat index p with p + 1; invalid where w == W-1.
            y_w = pltpu.roll(y, HW - 1, axis=1)
            dw = jnp.where(lane % W != W - 1, y_w - y, 0.0)
            out_ref[b, 2] = jnp.sum(dw * dw)
        else:
            out_ref[b, 2] = 0.0

        if spectral_tv and C > 1:
            # Channel (spectral) diff: small sublane-shifted slice.
            # TODO(synk): a sublane pltpu.roll + mask would avoid this slice
            # copy too; kept as a slice for lowering robustness.
            dc = y[1:, :] - y[:-1, :]
            out_ref[b, 3] = jnp.sum(dc * dc)
        else:
            out_ref[b, 3] = 0.0

    return kernel


def hybrid_loss(y, gt, *, lamd=0.1, spatial_tv=False, spectral_tv=False,
                spatial_weight=0.001, spectral_weight=0.001):
    """Pallas implementation of HybridLoss.forward.

    `lamd` is stored but unused in the reference forward pass; kept for
    signature parity. Degenerate sizes (C==1 with spectral_tv, H==1 or W==1
    with spatial_tv) divide by zero exactly like the PyTorch module would.
    """
    del lamd  # unused in the PyTorch forward as well
    B, C, H, W = y.shape
    HW = H * W

    # Free reshape: the two contiguous minor dims are merged so the kernel
    # sees a lane-dense (C, H*W) block per image.
    y2 = y.reshape(B, C, HW)
    gt2 = gt.reshape(B, C, HW)

    kernel = _make_hybrid_loss_kernel(C, H, W, spatial_tv, spectral_tv)

    # Per-step VMEM footprint: 2 inputs x 2 pipeline buffers x C*H*W*4 bytes.
    # TODO(synk): for large hyperspectral images add a second grid axis over
    # H*W chunks (multiples of W, with a W-element carry for the height term)
    # so the block stays a few MiB and pipelining is preserved.
    partials = pl.pallas_call(
        kernel,
        out_shape=jax.ShapeDtypeStruct((B, 4), jnp.float32),
        grid_spec=pltpu.PrefetchScalarGridSpec(
            num_scalar_prefetch=0,
            grid=(B,),
            in_specs=[
                pl.BlockSpec((1, C, HW), lambda b: (b, 0, 0)),
                pl.BlockSpec((1, C, HW), lambda b: (b, 0, 0)),
            ],
            # Whole (B, 4) partial-sum table stays resident in SMEM for the
            # grid; each step writes only its own row (no RMW chain).
            out_specs=pl.BlockSpec(memory_space=pltpu.MemorySpace.SMEM),
        ),
        # Single shared SMEM output => keep the batch axis sequential.
        # TODO(synk): for v7x megacore, emit per-core partial rows via a
        # blocked VMEM output and mark this axis "parallel".
        compiler_params=pltpu.CompilerParams(
            dimension_semantics=("arbitrary",)),
    )(y2, gt2)

    sums = jnp.sum(partials, axis=0)   # (4,) summed over batch
    abs_sum, h_tv, w_tv, c_tv = sums[0], sums[1], sums[2], sums[3]

    # L1Loss (mean reduction).
    total = abs_sum / jnp.float32(B * C * H * W)

    if spatial_tv:
        count_h = jnp.float32(C * (H - 1) * W)
        count_w = jnp.float32(C * H * (W - 1))
        total = total + jnp.float32(spatial_weight) * (
            h_tv / count_h + w_tv / count_w) / jnp.float32(B)

    if spectral_tv:
        count_c = jnp.float32((C - 1) * H * W)
        total = total + jnp.float32(spectral_weight) * 2.0 * (
            c_tv / count_c) / jnp.float32(B)

    return total


def _reference_hybrid_loss(y, gt, *, spatial_tv=False, spectral_tv=False,
                           spatial_weight=0.001, spectral_weight=0.001):
    """Pure-JAX reference mirroring the PyTorch module, for verification."""
    B, C, H, W = y.shape
    y32, gt32 = y.astype(jnp.float32), gt.astype(jnp.float32)
    total = jnp.mean(jnp.abs(y32 - gt32))
    if spatial_tv:
        h_tv = jnp.sum((y32[:, :, 1:, :] - y32[:, :, :-1, :]) ** 2)
        w_tv = jnp.sum((y32[:, :, :, 1:] - y32[:, :, :, :-1]) ** 2)
        count_h = C * (H - 1) * W
        count_w = C * H * (W - 1)
        total = total + spatial_weight * (h_tv / count_h + w_tv / count_w) / B
    if spectral_tv:
        c_tv = jnp.sum((y32[:, 1:, :, :] - y32[:, :-1, :, :]) ** 2)
        count_c = (C - 1) * H * W
        total = total + spectral_weight * 2 * (c_tv / count_c) / B
    return total


if __name__ == "__main__":
    key = jax.random.PRNGKey(0)
    ky, kg = jax.random.split(key)
    B, C, H, W = 2, 4, 16, 16
    y = jax.random.normal(ky, (B, C, H, W), dtype=jnp.float32)
    gt = jax.random.normal(kg, (B, C, H, W), dtype=jnp.float32)

    # Full path: both TV terms enabled.
    out = hybrid_loss(y, gt, spatial_tv=True, spectral_tv=True)
    out = jax.block_until_ready(out)
    ref = _reference_hybrid_loss(y, gt, spatial_tv=True, spectral_tv=True)
    assert jnp.allclose(out, ref, rtol=1e-5, atol=1e-6), (out, ref)

    # Module-default path (both TV terms disabled): pure L1 kernel.
    out2 = jax.block_until_ready(hybrid_loss(y, gt))
    ref2 = _reference_hybrid_loss(y, gt)
    assert jnp.allclose(out2, ref2, rtol=1e-5, atol=1e-6), (out2, ref2)

    print("KERNEL_OK")
</pallas_src>

<mosaic_0001>
module attributes {stable_mosaic.version = 11 : i64} {
  func.func @kernel(%arg0: i32, %arg1: memref<1x4x256xf32, #tpu.memory_space<vmem>>, %arg2: memref<1x4x256xf32, #tpu.memory_space<vmem>>, %arg3: memref<2x4xf32, #tpu.memory_space<smem>>) attributes {dimension_semantics = [#tpu.dimension_semantics<arbitrary>], iteration_bounds = array<i64: 2>, scalar_prefetch = 0 : i64, scratch_operands = 0 : i64, tpu.core_type = #tpu.core_type<tc>, window_params = [{transform_indices = @transform_0, window_bounds = array<i64: 1, 4, 256>}, {transform_indices = @transform_1, window_bounds = array<i64: 1, 4, 256>}, {transform_indices = @transform_2, window_bounds = array<i64: 2, 4>}]} {
    %c0 = arith.constant 0 : index
    %c0_0 = arith.constant 0 : index
    %c0_1 = arith.constant 0 : index
    %0 = vector.load %arg1[%c0, %c0_0, %c0_1] : memref<1x4x256xf32, #tpu.memory_space<vmem>>, vector<1x4x256xf32>
    %1 = vector.shape_cast %0 : vector<1x4x256xf32> to vector<4x256xf32>
    %c0_2 = arith.constant 0 : index
    %c0_3 = arith.constant 0 : index
    %c0_4 = arith.constant 0 : index
    %2 = vector.load %arg2[%c0_2, %c0_3, %c0_4] : memref<1x4x256xf32, #tpu.memory_space<vmem>>, vector<1x4x256xf32>
    %3 = vector.shape_cast %2 : vector<1x4x256xf32> to vector<4x256xf32>
    %4 = arith.subf %1, %3 : vector<4x256xf32>
    %5 = math.absf %4 : vector<4x256xf32>
    %6 = vector.shape_cast %5 : vector<4x256xf32> to vector<1x4x256xf32>
    %cst = arith.constant dense<0.000000e+00> : vector<1xf32>
    %7 = vector.multi_reduction <add>, %6, %cst [1, 2] : vector<1x4x256xf32> to vector<1xf32>
    %8 = vector.shape_cast %7 : vector<1xf32> to vector<1x1x1xf32>
    %9 = vector.extract %8[0, 0, 0] : f32 from vector<1x1x1xf32>
    %10 = arith.index_cast %arg0 : i32 to index
    %c0_5 = arith.constant 0 : index
    %11 = memref.load %arg3[%10, %c0_5] : memref<2x4xf32, #tpu.memory_space<smem>>
    memref.store %9, %arg3[%10, %c0_5] : memref<2x4xf32, #tpu.memory_space<smem>>
    %12 = tpu.iota {dimensions = array<i32: 1>} : vector<4x256xi32>
    %c240_i32 = arith.constant 240 : i32
    %13 = tpu.dynamic_rotate %1 by %c240_i32 dim 1 : vector<4x256xf32>, i32 -> vector<4x256xf32>
    %c240_i32_6 = arith.constant 240 : i32
    %14 = vector.broadcast %c240_i32_6 : i32 to vector<4x256xi32>
    %15 = arith.cmpi slt, %12, %14 : vector<4x256xi32>
    %16 = arith.subf %13, %1 : vector<4x256xf32>
    %cst_7 = arith.constant 0.000000e+00 : f32
    %17 = vector.broadcast %cst_7 : f32 to vector<4x256xf32>
    %18 = arith.select %15, %16, %17 : vector<4x256xi1>, vector<4x256xf32>
    %19 = arith.mulf %18, %18 : vector<4x256xf32>
    %20 = vector.shape_cast %19 : vector<4x256xf32> to vector<1x4x256xf32>
    %cst_8 = arith.constant dense<0.000000e+00> : vector<1xf32>
    %21 = vector.multi_reduction <add>, %20, %cst_8 [1, 2] : vector<1x4x256xf32> to vector<1xf32>
    %22 = vector.shape_cast %21 : vector<1xf32> to vector<1x1x1xf32>
    %23 = vector.extract %22[0, 0, 0] : f32 from vector<1x1x1xf32>
    %24 = arith.index_cast %arg0 : i32 to index
    %c1 = arith.constant 1 : index
    %25 = memref.load %arg3[%24, %c1] : memref<2x4xf32, #tpu.memory_space<smem>>
    memref.store %23, %arg3[%24, %c1] : memref<2x4xf32, #tpu.memory_space<smem>>
    %c255_i32 = arith.constant 255 : i32
    %26 = tpu.dynamic_rotate %1 by %c255_i32 dim 1 : vector<4x256xf32>, i32 -> vector<4x256xf32>
    %c16_i32 = arith.constant 16 : i32
    %c0_i32 = arith.constant 0 : i32
    %27 = arith.cmpi eq, %c16_i32, %c0_i32 : i32
    %c1_i32 = arith.constant 1 : i32
    %28 = arith.select %27, %c1_i32, %c16_i32 : i32
    %29 = vector.broadcast %28 : i32 to vector<4x256xi32>
    %30 = arith.remsi %12, %29 : vector<4x256xi32>
    %c0_i32_9 = arith.constant 0 : i32
    %31 = vector.broadcast %c0_i32_9 : i32 to vector<4x256xi32>
    %32 = arith.cmpi ne, %30, %31 : vector<4x256xi32>
    %c0_i32_10 = arith.constant 0 : i32
    %33 = vector.broadcast %c0_i32_10 : i32 to vector<4x256xi32>
    %34 = arith.cmpi slt, %30, %33 : vector<4x256xi32>
    %c0_i32_11 = arith.constant 0 : i32
    %35 = arith.cmpi slt, %28, %c0_i32_11 : i32
    %36 = vector.broadcast %35 : i1 to vector<4x256xi1>
    %37 = vector.broadcast %36 : vector<4x256xi1> to vector<4x256xi1>
    %38 = arith.xori %34, %37 : vector<4x256xi1>
    %39 = arith.andi %38, %32 : vector<4x256xi1>
    %40 = vector.broadcast %28 : i32 to vector<4x256xi32>
    %41 = arith.addi %30, %40 : vector<4x256xi32>
    %42 = arith.select %39, %41, %30 : vector<4x256xi1>, vector<4x256xi32>
    %c15_i32 = arith.constant 15 : i32
    %43 = vector.broadcast %c15_i32 : i32 to vector<4x256xi32>
    %44 = arith.cmpi ne, %42, %43 : vector<4x256xi32>
    %45 = arith.subf %26, %1 : vector<4x256xf32>
    %cst_12 = arith.constant 0.000000e+00 : f32
    %46 = vector.broadcast %cst_12 : f32 to vector<4x256xf32>
    %47 = arith.select %44, %45, %46 : vector<4x256xi1>, vector<4x256xf32>
    %48 = arith.mulf %47, %47 : vector<4x256xf32>
    %49 = vector.shape_cast %48 : vector<4x256xf32> to vector<1x4x256xf32>
    %cst_13 = arith.constant dense<0.000000e+00> : vector<1xf32>
    %50 = vector.multi_reduction <add>, %49, %cst_13 [1, 2] : vector<1x4x256xf32> to vector<1xf32>
    %51 = vector.shape_cast %50 : vector<1xf32> to vector<1x1x1xf32>
    %52 = vector.extract %51[0, 0, 0] : f32 from vector<1x1x1xf32>
    %53 = arith.index_cast %arg0 : i32 to index
    %c2 = arith.constant 2 : index
    %54 = memref.load %arg3[%53, %c2] : memref<2x4xf32, #tpu.memory_space<smem>>
    memref.store %52, %arg3[%53, %c2] : memref<2x4xf32, #tpu.memory_space<smem>>
    %55 = vector.extract_strided_slice %1 {offsets = [1, 0], sizes = [3, 256], strides = [1, 1]} : vector<4x256xf32> to vector<3x256xf32>
    %56 = vector.extract_strided_slice %1 {offsets = [0, 0], sizes = [3, 256], strides = [1, 1]} : vector<4x256xf32> to vector<3x256xf32>
    %57 = arith.subf %55, %56 : vector<3x256xf32>
    %58 = arith.mulf %57, %57 : vector<3x256xf32>
    %59 = vector.shape_cast %58 : vector<3x256xf32> to vector<1x3x256xf32>
    %cst_14 = arith.constant dense<0.000000e+00> : vector<1xf32>
    %60 = vector.multi_reduction <add>, %59, %cst_14 [1, 2] : vector<1x3x256xf32> to vector<1xf32>
    %61 = vector.shape_cast %60 : vector<1xf32> to vector<1x1x1xf32>
    %62 = vector.extract %61[0, 0, 0] : f32 from vector<1x1x1xf32>
    %63 = arith.index_cast %arg0 : i32 to index
    %c3 = arith.constant 3 : index
    %64 = memref.load %arg3[%63, %c3] : memref<2x4xf32, #tpu.memory_space<smem>>
    memref.store %62, %arg3[%63, %c3] : memref<2x4xf32, #tpu.memory_space<smem>>
    return
  }
  func.func @transform_0(%arg0: i32) -> (i32, i32, i32) {
    %c0_i32 = arith.constant 0 : i32
    %c0_i32_0 = arith.constant 0 : i32
    %c0_i32_1 = arith.constant 0 : i32
    return %arg0, %c0_i32, %c0_i32_0 : i32, i32, i32
  }
  func.func @transform_1(%arg0: i32) -> (i32, i32, i32) {
    %c0_i32 = arith.constant 0 : i32
    %c0_i32_0 = arith.constant 0 : i32
    %c0_i32_1 = arith.constant 0 : i32
    return %arg0, %c0_i32, %c0_i32_0 : i32, i32, i32
  }
  func.func @transform_2(%arg0: i32) -> (i32, i32) {
    %c0_i32 = arith.constant 0 : i32
    %c0_i32_0 = arith.constant 0 : i32
    %c0_i32_1 = arith.constant 0 : i32
    return %c0_i32, %c0_i32_0 : i32, i32
  }
}

</mosaic_0001>

<bundles_post_ra>
// kernel: tpu_custom_call.1
= control target key start
LH: loop header
LB: loop body
LE: loop exit
PB: predicated region body
PF: predicated region fallthrough
CT: control target
= control target key end

     0   :  { %7 = vsyncpa [#allocation3], 0  ;;  %s810_s0 = inlined_call_operand.hbm [shape: f32[2,4,256], index: 0, kind: input, shape index: {}]   ;;  %s811_s1 = inlined_call_operand.hbm [shape: f32[2,4,256], index: 1, kind: input, shape index: {}]   ;;  %s812_s2 = inlined_call_operand.hbm [shape: f32[2,4], index: 2, kind: output, shape index: {}]  }
   0x1   :  { %9 = vsyncpa [#allocation3 + $0x1], 0 }
   0x2   :  { %10 = vsyncpa [#allocation6], 0 }
   0x3   :  { %12 = vsyncpa [#allocation6 + $0x1], 0 }
   0x4   :  { %13 = vsyncpa [#allocation4], 0  ;;  %s635_s9 = smov 0   ;;  %s637_s10 = smov 0  }
   0x5   :  { %s639_s11 = smov 0   ;;  %s641_s12 = smov 0  }
   0x6 LB: > { %s654_s13 = sadd.s32 4294967295, %s613_s12   ;;  %s657_s14 = sadd.s32 1, %s613_s12   ;;  %s613_s12 = sphi %s641_s12, %s824_s12   ;;  %s609_s11 = sphi %s639_s11, %s823_s11   ;;  %s605_s10 = sphi %s637_s10, %s822_s10   ;;  %s601_s9 = sphi %s635_s9, %s821_s9  }
   0x7   : > { %s23_s15 = ssub.s32 %s613_s12, %s657_s14  ;;  %s26_s16 = sadd.s32 1, %s609_s11 }
   0x8   : > { %p24_p0 = scmp.eq.s32.totalorder %s23_s15, 0  ;;  %p33_p1 = scmp.ne.s32.totalorder %s609_s11, %s605_s10 }
   0x9   : > { %p34_p2 = scmp.eq.s32.totalorder %s613_s12, 0  ;;  %p39_p3 = scmp.ne.s32.totalorder %s605_s10, %s601_s9 }
   0xa   : > { %s667_s17 = scalar_select %p24_p0, %s609_s11, %s26_s16  }
   0xb   : > { %p35_p4 = por %p34_p2, %p33_p1  ;;  %p40_p5 = scmp.eq.s32.totalorder %s654_s13, 0 }
   0xc   : > { %p460_p6 = scmp.lt.s32.totalorder %s613_s12, 2  ;;  %s676_s19 = sand.u32 1, %s609_s11  }
   0xd   : > { %p671_p7 = por %p40_p5, %p39_p3  ;;  %s418_s20 = sshll.u32 %s676_s19, 3 }
   0xe   : > { %s435_s21 = sshll.u32 %s613_s12, 7  ;;  %s114_s25 = scalar_lea.vmem [#allocation2], %s418_s20 }
   0xf   : > { %s814_s18 = scalar_select %p671_p7, 1, 0 }
  0x10   : > { %s685_s24 = scalar_lea.hbm %s810_s0, %s435_s21  ;;  %s122_s26 = sshll.u32 %s114_s25, 4  ;;  %s689_s26 = int_to_ptr.vmem [resolvable:$true] %s122_s26 }
  0x11   : > { %p691_p8 = pnand %p460_p6, %p35_p4  ;;  %s111_s28 = scalar_lea.sflag [#allocation3], %s676_s19 }
  0x12   : > { %s499_s29 = scalar_lea.hbm %s685_s24, 128  ;;  %s504_s4 = scalar_lea.hbm %s810_s0, 256 }
  0x13   : > { %p500_p11 = scmp.ne.s32.totalorder %s685_s24, %s499_s29  ;;  %p501_p12 = pneg %p691_p8 }
  0x14   : > { %p505_p1 = scmp.lt.u32.totalorder %s685_s24, %s810_s0  ;;  %p506_p2 = scmp.lt.u32.totalorder %s504_s4, %s499_s29 }
  0x15   : > { %p502_p13 = pnand %p501_p12, %p500_p11  ;;  %p508_p4 = scmp.lt.u32.totalorder %s499_s29, %s685_s24 }
  0x16   : > { %p507_p3 = por %p506_p2, %p505_p1 }
  0x17   : > { %p503_p0 = pneg %p502_p13 }
  0x18   : > { %p509_p5 = por %p508_p4, %p507_p3 }
  0x1a   : > { %p510_p6 = pnand %p509_p5, %p503_p0 }
  0x1c   : > { %513 = shalt.err (!%p510_p6)
}
  0x1d   : > { %s514_s7 = scalar_lea.vmem %s689_s26, 128  ;;  %s615_s8 = smov [#allocation2]  }
  0x1e   : > { %p515_p11 = scmp.ne.s32.totalorder %s689_s26, %s514_s7  ;;  %s519_s9 = sshll.u32 %s615_s8, 4  ;;  %s520_s9 = int_to_ptr.vmem [resolvable:$false] %s519_s9 }
  0x1f   : > { %s521_s15 = scalar_lea.vmem %s520_s9, 256  ;;  %p522_p10 = scmp.lt.s32.totalorder %s689_s26, %s520_s9 }
  0x20   : > { %p517_p13 = pnand %p515_p11, %p501_p12  ;;  %p523_p1 = scmp.lt.s32.totalorder %s521_s15, %s514_s7 }
  0x22   : > { %p518_p9 = pneg %p517_p13  ;;  %p524_p2 = por %p523_p1, %p522_p10 }
  0x24   : > { %p525_p3 = pnand %p524_p2, %p518_p9 }
  0x26   : > { %528 = shalt.err (!%p525_p3)
}
  0x27   : > { %456 = dma.hbm_to_vmem [thread:$0]  (!%p691_p8), %s685_s24, 128, %s689_s26, %s111_s28  }
  0x28   : > { %p816_p0 = scmp.lt.s32.totalorder %s613_s12, 3  ;;  %p817_p4 = scmp.ge.s32.totalorder %s613_s12, 1 }
  0x29   : > { %s736_s25 = scalar_lea.hbm %s811_s1, %s435_s21  ;;  %s133_s29 = scalar_lea.vmem [#allocation5], %s418_s20 }
  0x2a   : > { %p727_p5 = pnand %p817_p4, %p816_p0  ;;  %s141_s30 = sshll.u32 %s133_s29, 4  ;;  %s142_s30 = int_to_ptr.vmem [resolvable:$true] %s141_s30 }
  0x2b   : > { %s130_s24 = scalar_lea.sflag [#allocation6], %s676_s19  ;;  %s529_s26 = scalar_lea.hbm %s736_s25, 128 }
  0x2c   : > { %s818_s16 = scalar_select %p727_p5, 1, 0 }
  0x2d   : > { %p530_p9 = scmp.ne.s32.totalorder %s736_s25, %s529_s26  ;;  %s534_s21 = scalar_lea.hbm %s811_s1, 256 }
  0x2e   : > { %p535_p11 = scmp.lt.u32.totalorder %s736_s25, %s811_s1  ;;  %p536_p13 = scmp.lt.u32.totalorder %s534_s21, %s529_s26 }
  0x2f   : > { %p532_p10 = pnand %p530_p9, %p501_p12  ;;  %p538_p2 = scmp.lt.u32.totalorder %s529_s26, %s736_s25 }
  0x30   : > { %p537_p1 = por %p536_p13, %p535_p11 }
  0x31   : > { %p533_p6 = pneg %p532_p10 }
  0x32   : > { %p539_p3 = por %p538_p2, %p537_p1 }
  0x34   : > { %p540_p0 = pnand %p539_p3, %p533_p6 }
  0x36   : > { %543 = shalt.err (!%p540_p0)
}
  0x37   : > { %s544_s19 = scalar_lea.vmem %s142_s30, 128  ;;  %s616_s20 = smov [#allocation5]  }
  0x38   : > { %p545_p4 = scmp.ne.s32.totalorder %s142_s30, %s544_s19  ;;  %s549_s5 = sshll.u32 %s616_s20, 4  ;;  %s550_s5 = int_to_ptr.vmem [resolvable:$false] %s549_s5 }
  0x39   : > { %s551_s6 = scalar_lea.vmem %s550_s5, 256  ;;  %p552_p7 = scmp.lt.s32.totalorder %s142_s30, %s550_s5 }
  0x3a   : > { %p547_p9 = pnand %p545_p4, %p501_p12  ;;  %p553_p5 = scmp.lt.s32.totalorder %s551_s6, %s544_s19 }
  0x3c   : > { %p548_p10 = pneg %p547_p9  ;;  %p554_p11 = por %p553_p5, %p552_p7 }
  0x3e   : > { %p555_p13 = pnand %p554_p11, %p548_p10 }
  0x40   : > { %558 = shalt.err (!%p555_p13)
}
  0x41   : > { %459 = dma.hbm_to_vmem [thread:$0]  (!%p691_p8), %s736_s25, 128, %s142_s30, %s130_s24  }
  0x42   : > { %p819_p6 = scmp.ne.s32.totalorder %s818_s16, 0 }
  0x43   : > { %s152_s7 = sand.u32 (!%p819_p6), 1, %s605_s10   ;;  %p820_p12 = scmp.ne.s32.totalorder (!%p819_p6), %s814_s18, 0 }
  0x44   : > { %150 = sbr.rel (%p819_p6) target bundleno = 422 (0x1a6), region = 28  ;;  %s425_s8 = sshll.u32 (!%p819_p6), %s152_s7, 3 }
  0x45   : > { %s153_s9 = scalar_lea.sflag (!%p819_p6), [#allocation3], %s152_s7  ;;  %s156_s15 = scalar_lea.vmem (!%p819_p6), [#allocation2], %s425_s8 }
  0x4b   : > { %588 = dma.done.wait (%p820_p12), %s153_s9, 128  }
  0x4c   : > { %590 = vsyncadd (%p820_p12), %s153_s9, 4294967168  ;;  %s162_s22 = scalar_lea.sflag [#allocation6], %s152_s7  ;;  %s165_s23 = scalar_lea.vmem [#allocation5], %s425_s8 }
  0x4d   : > { %592 = dma.done.wait (%p820_p12), %s162_s22, 128  }
  0x4e   : > { %594 = vsyncadd (%p820_p12), %s162_s22, 4294967168  ;;  %v186_v0 = vld [vmem:[%s156_s15] sm:$0xff]  ;;  %s617_s27 = smov 127   ;;  %s618_s16 = smov 112   ;;  %v187_v2 = vld [vmem:[%s165_s23] sm:$0xff]  ;;  %vm193_vm0 = vcmask 1043456   ;;  %v209_v9 = vlaneseq }
  0x4f   : > { %245 = vrot.lane.b32.xlu1 %v186_v0, %s617_s27  ;;  %215 = vrot.lane.b32.xlu0 %v186_v0, %s618_s16  ;;  %v213_v1 = vcombine.high %v186_v0, %v186_v0  ;;  %v188_v3 = vsub.f32 %v186_v0, %v187_v2  ;;  %v299_v10 = vrot.slane %v186_v0, 7  ;;  %vm309_vm6 = vcmask 1042432   ;;  %s427_s18 = sshll.u32 %s654_s13, 7  ;;  %p461_p7 = scmp.eq.s32.totalorder %s654_s13, 1 }
  0x50   : > { %v210_v11 = vand.u32 127, %v209_v9  ;;  %s778_s29 = scalar_lea.smem [#allocation7], %s427_s18  ;;  %s559_s19 = scalar_lea.hbm %s812_s2, 32 }
  0x51   : > { %v189_v4 = vand.u32 2147483647, %v188_v3  ;;  %v301_v12 = vsub.f32 %v186_v0, %v299_v10  ;;  %s379_s30 = scalar_lea.smem %s778_s29, 1 [#allocation7]  ;;  %s382_s24 = scalar_lea.smem %s778_s29, 2 [#allocation7] }
  0x52   : > { %v211_v13 = vadd.s32 128, %v210_v11  ;;  %v256_v17 = vand.u32 15, %v210_v11  ;;  %vm249_vm1 = vcmp.lt.s32.totalorder %v210_v11, 127  ;;  %vm219_vm2 = vcmp.lt.s32.totalorder %v210_v11, 112  ;;  %s385_s12 = scalar_lea.smem %s778_s29, 3 [#allocation7]  ;;  %p560_p8 = scmp.ne.s32.totalorder %s812_s2, %s559_s19 }
  0x53   : > { %247 = vrot.lane.b32.xlu1 %v213_v1, %s617_s27  ;;  %217 = vrot.lane.b32.xlu0 %v213_v1, %s618_s16  ;;  %v191_v5 = vcombine.high %v189_v4, %v189_v4  ;;  %v194_v6 = vsel %vm193_vm0, %v189_v4, 0.0  ;;  %v302_v14 = vmul.f32 %v301_v12, %v301_v12  ;;  %p565_p2 = scmp.lt.u32.totalorder %s559_s19, %s812_s2 }
  0x54   : > { %v263_v18 = vand.u32 15, %v211_v13  ;;  %vm223_vm3 = vcmp.lt.s32.totalorder %v211_v13, 240  ;;  %vm276_vm4 = vcmp.ne.s32.totalorder %v256_v17, 15  ;;  %p561_p5 = pnand %p560_p8, %p461_p7 }
  0x55   : > { %v195_v7 = vsel %vm193_vm0, %v191_v5, 0.0  ;;  %v304_v19 = vcombine.high %v302_v14, %v302_v14  ;;  %v305_v22 = vrot.slane %v302_v14, 1 }
  0x56   : > { %v196_v8 = vadd.f32 %v195_v7, %v194_v6  ;;  %vm277_vm5 = vcmp.ne.s32.totalorder %v263_v18, 15  ;;  %p562_p1 = pneg %p561_p5 }
  0x57   : > { %v306_v31 = vrot.slane %v304_v19, 1  ;;  %v310_v40 = vsel %vm309_vm6, %v305_v22, 0.0 }
  0x58   : > { %p567_p3 = pnand %p565_p2, %p562_p1 }
  0x59   : > { %v311_v44 = vsel %vm309_vm6, %v306_v31, 0.0 }
  0x5a   : > { %v312_v47 = vadd.f32 %v311_v44, %v310_v40 }
  0x72   : > { %197 = vadd.xlane.f32.xlu0 %v196_v8 }
  0xc1   : > { %v246_v15 = vpop.permute.xlu1 %245  ;;  %v216_v16 = vpop.permute.xlu0 %215 }
  0xc5   : > { %v248_v20 = vpop.permute.xlu1 %247  ;;  %v218_v21 = vpop.permute.xlu0 %217 }
  0xc6   : > { %v250_v23 = vsel %vm249_vm1, %v246_v15, %v248_v20  ;;  %v251_v24 = vsel %vm249_vm1, %v248_v20, %v246_v15  ;;  %v220_v25 = vsel %vm219_vm2, %v216_v16, %v218_v21  ;;  %v221_v26 = vsel %vm219_vm2, %v218_v21, %v216_v16 }
  0xc7   : > { %v278_v27 = vsub.f32 %v250_v23, %v186_v0  ;;  %v279_v28 = vsub.f32 %v251_v24, %v213_v1  ;;  %v224_v29 = vsub.f32 %v220_v25, %v186_v0  ;;  %v225_v30 = vsub.f32 %v221_v26, %v213_v1 }
  0xc9   : > { %v228_v32 = vmul.f32 %v224_v29, %v224_v29  ;;  %v227_v33 = vsel %vm223_vm3, %v225_v30, 0.0  ;;  %v280_v34 = vsel %vm276_vm4, %v278_v27, 0.0  ;;  %v281_v35 = vsel %vm277_vm5, %v279_v28, 0.0 }
  0xca   : > { %v229_v36 = vmul.f32 %v227_v33, %v227_v33  ;;  %v282_v37 = vmul.f32 %v280_v34, %v280_v34  ;;  %v283_v38 = vmul.f32 %v281_v35, %v281_v35 }
  0xcb   : > { %v230_v39 = vsel %vm193_vm0, %v228_v32, 0.0 }
  0xcc   : > { %v231_v41 = vsel %vm193_vm0, %v229_v36, 0.0  ;;  %v284_v42 = vsel %vm193_vm0, %v282_v37, 0.0  ;;  %v285_v43 = vsel %vm193_vm0, %v283_v38, 0.0 }
  0xcd   : > { %v232_v45 = vadd.f32 %v231_v41, %v230_v39  ;;  %v286_v46 = vadd.f32 %v285_v43, %v284_v42 }
  0xcf   : > { %233 = vadd.xlane.f32.xlu1 %v232_v45  ;;  %287 = vadd.xlane.f32.xlu0 %v286_v46 }
  0xd3   : > { %313 = vadd.xlane.f32.xlu0 %v312_v47 }
  0xff   : > { %v198_v48 = vpop.xlane.xlu0 %197 }
 0x100   : > { %v199_v49 = vrot.slane %v198_v48, 4 }
 0x102   : > { %v200_v50 = vadd.f32 %v199_v49, %v198_v48 }
 0x104   : > { %v201_v51 = vrot.slane %v200_v50, 2 }
 0x106   : > { %v202_v52 = vadd.f32 %v201_v51, %v200_v50 }
 0x108   : > { %v203_v53 = vrot.slane %v202_v52, 1 }
 0x10a   : > { %v204_v54 = vadd.f32 %v203_v53, %v202_v52 }
 0x10c   : > { %437 = vpush %v204_v54 }
 0x13d   : > { %s438_s25 = spop %437 }
 0x13e   : > { %208 = sst [smem:[%s778_s29]] %s438_s25 }
 0x15c   : > { %v234_v55 = vpop.xlane.xlu1 %233  ;;  %v288_v56 = vpop.xlane.xlu0 %287 }
 0x15d   : > { %v235_v57 = vrot.slane %v234_v55, 4  ;;  %v289_v58 = vrot.slane %v288_v56, 4 }
 0x15f   : > { %v236_v59 = vadd.f32 %v235_v57, %v234_v55  ;;  %v290_v60 = vadd.f32 %v289_v58, %v288_v56 }
 0x160   : > { %v314_v61 = vpop.xlane.xlu0 %313 }
 0x161   : > { %v237_v62 = vrot.slane %v236_v59, 2  ;;  %v291_v63 = vrot.slane %v290_v60, 2  ;;  %v315_v0 = vrot.slane %v314_v61, 4 }
 0x163   : > { %v238_v1 = vadd.f32 %v237_v62, %v236_v59  ;;  %v316_v2 = vadd.f32 %v315_v0, %v314_v61  ;;  %v292_v3 = vadd.f32 %v291_v63, %v290_v60 }
 0x165   : > { %v317_v4 = vrot.slane %v316_v2, 2  ;;  %v239_v5 = vrot.slane %v238_v1, 1  ;;  %v293_v6 = vrot.slane %v292_v3, 1 }
 0x167   : > { %v318_v7 = vadd.f32 %v317_v4, %v316_v2  ;;  %v240_v8 = vadd.f32 %v239_v5, %v238_v1  ;;  %v294_v9 = vadd.f32 %v293_v6, %v292_v3 }
 0x169   : > { %439 = vpush %v240_v8  ;;  %v319_v10 = vrot.slane %v318_v7, 1 }
 0x16a   : > { %441 = vpush %v294_v9 }
 0x16b   : > { %v320_v11 = vadd.f32 %v319_v10, %v318_v7 }
 0x16d   : > { %443 = vpush %v320_v11 }
 0x19a   : > { %s440_s26 = spop %439 }
 0x19b   : > { %244 = sst [smem:[%s379_s30]] %s440_s26  ;;  %s442_s28 = spop %441 }
 0x19c   : > { %298 = sst [smem:[%s382_s24]] %s442_s28 }
 0x19e   : > { %s444_s21 = spop %443 }
 0x19f   : > { %324 = sst [smem:[%s385_s12]] %s444_s21 }
 0x1a0   : > { %570 = shalt.err (!%p567_p3)
}
 0x1a1   : > { %s619_s8 = smov [#allocation7]  }
 0x1a2   : > { %450 = dma.smem_to_hbm (%p461_p7), %s619_s8, 32, %s812_s2, [#allocation4]  }
 0x1a3   : > { %596 = dma.done.wait (%p461_p7), [#allocation4], 32  }
 0x1a4   : > { %598 = vsyncadd (%p461_p7), [#allocation4], 4294967264 }
 0x1a5   : > { %338 = sfence }
 0x1a6 PF: > { %p16_p0 = scmp.ge.s32.totalorder %s657_s14, 4   ;;  %s821_s9 = smov %s605_s10 }
 0x1a7   : > { %s822_s10 = smov %s609_s11  ;;  %s823_s11 = smov %s667_s17 }
 0x1a8   : > { %s824_s12 = smov %s657_s14  ;;  %18 = sbr.rel (!%p16_p0) target bundleno = 6 (0x6), region = 82 }
 0x1af   :  { %344 = vsyncpa [#allocation3], 1 }
 0x1b0   :  { %346 = vsyncpa [#allocation3 + $0x1], 1 }
 0x1b1   :  { %347 = vsyncpa [#allocation6], 1 }
 0x1b2   :  { %349 = vsyncpa [#allocation6 + $0x1], 1 }
 0x1b3   :  { %350 = vsyncpa [#allocation4], 1 }
 0x1b4   :  { %352 = vsyncpa [#allocation4 + $0x1], 1 }

</bundles_post_ra>
